<compile_context>
chip_gen: v5e
topology: v5e:2x2
jax: 0.10.0
libtpu: 0.0.40
codegen_flags: <defaults>
</compile_context>

<pallas_src>
import functools

import jax
import jax.numpy as jnp
from jax import lax
from jax.experimental import pallas as pl
from jax.experimental.pallas import tpu as pltpu

MARGIN = 1.0
EPS = 1e-9


def _round_up(x, m):
    return ((x + m - 1) // m) * m


def _vmem_config():
    """(vmem_limit_bytes, tile budget bytes, row cap) keyed off the chip."""
    phys = 64 * 1024 * 1024                       # conservative default (v7x)
    try:
        info = pltpu.get_tpu_info()
        phys = int(getattr(info, "vmem_capacity_bytes", phys) or phys)
    except Exception:
        pass
    vmem_limit = min(phys // 2, 64 * 1024 * 1024)  # 32 MiB v7x, 64 MiB v5e/v6e
    budget = (vmem_limit * 3) // 4                 # headroom for out bufs/misc
    row_cap = 2048 if phys <= 64 * 1024 * 1024 else 4096
    return vmem_limit, budget, row_cap


def _pick_tile_b(D, itemsize, budget_bytes, row_cap):
    # Honest footprint: lane-padded embedding rows (round_up(D,128)), the
    # lane-padded (TILE_B, 1) f32 target column, and 2 pipeline buffers per
    # streamed input.  (The Buffered(3) upgrade re-checks the same budget with
    # 3 buffers before enabling itself.)
    d_pad = _round_up(max(D, 1), 128)
    bytes_per_row = 2 * (2 * d_pad * itemsize + 128 * 4)
    max_rows = max(8, budget_bytes // bytes_per_row)
    # TODO(synk): extremely large D (where even 8 rows exceed the budget) would
    # need a second "arbitrary" grid axis over D with a distance accumulator in
    # VMEM scratch and a pl.when-gated hinge epilogue; not implemented here.
    return int(max(8, min(row_cap, (max_rows // 8) * 8)))


def _contrastive_loss_kernel(o1_ref, o2_ref, t_ref, out_ref, *, margin, eps,
                             batch, tile_b):
    # Hot path per (TILE_B, D) tile: VPU diff/square in f32, XLU lane reduce
    # over D, per-row hinge epilogue (sqrt on the EUP slot), then a sublane
    # reduce down to one partial sum.  All filler under the embedding DMA --
    # the kernel is bandwidth bound.
    o1 = o1_ref[...].astype(jnp.float32)
    o2 = o2_ref[...].astype(jnp.float32)
    diff = o2 - o1
    distances = jnp.sum(diff * diff, axis=1, keepdims=True)       # (TILE_B, 1)
    t = t_ref[...]                                                # (TILE_B, 1)
    hinge = jnp.maximum(margin - jnp.sqrt(distances + eps), 0.0)
    losses = 0.5 * (t * distances + (1.0 - t) * hinge * hinge)    # (TILE_B, 1)

    # Tail-block masking: rows >= batch were read past the end of the
    # (unpadded) inputs and hold garbage -> force their loss to exactly 0
    # before the reduction (jnp.where is a select, so NaN garbage is safe).
    rows = pl.program_id(0) * tile_b + lax.broadcasted_iota(
        jnp.int32, (tile_b, 1), 0)
    losses = jnp.where(rows < batch, losses, 0.0)

    # One partial sum per grid step (lane dim is already 1 -> sublane reduce).
    out_ref[...] = jnp.sum(losses, axis=0, keepdims=True).reshape(1, 1, 1)


def contrastive_loss(output1, output2, target, *, margin=MARGIN, eps=EPS,
                     size_average=True, tile_b=None):
    """output1, output2: (B, D) float; target: (B,) {0,1}. Returns scalar f32."""
    B, D = output1.shape
    itemsize = jnp.dtype(output1.dtype).itemsize
    vmem_limit, budget, row_cap = _vmem_config()

    if tile_b is None:
        tile_b = _pick_tile_b(D, itemsize, budget, row_cap)
    if B <= 8:
        # Single full-extent block (block dim == full array dim is always legal).
        tile_b = B
    else:
        # Multiple of 8, never larger than the array (last block may straddle
        # the end of the batch; those rows are masked in the kernel).
        tile_b = max(8, min((int(tile_b) // 8) * 8, (B // 8) * 8, row_cap))
    num_blocks = pl.cdiv(B, tile_b)

    # Target is tiny: stream it as an f32 column alongside the embeddings.
    # No padding needed -- tail-block garbage is masked in the kernel.
    t = target.astype(jnp.float32).reshape(B, 1)

    # Real per-buffer VMEM footprint (lane padding included).
    d_pad = _round_up(max(D, 1), 128)
    emb_buf = tile_b * d_pad * itemsize
    tgt_buf = tile_b * 128 * 4
    # Deepen pipelining on small tiles, applied to every streamed input, but
    # only when the 3-deep footprint still fits inside the budget.
    deep = (num_blocks >= 8 and emb_buf < (2 << 20)
            and 3 * (2 * emb_buf + tgt_buf) <= budget)
    spec_kw = dict(pipeline_mode=pl.Buffered(3)) if deep else {}

    kernel = functools.partial(_contrastive_loss_kernel, margin=float(margin),
                               eps=float(eps), batch=B, tile_b=tile_b)

    cost = pl.CostEstimate(
        flops=4 * B * D + 8 * B,
        transcendentals=B,
        bytes_accessed=2 * B * D * itemsize + 4 * B + 4 * num_blocks,
    )

    partial_sums = pl.pallas_call(
        kernel,
        out_shape=jax.ShapeDtypeStruct((num_blocks, 1, 1), jnp.float32),
        grid_spec=pltpu.PrefetchScalarGridSpec(
            num_scalar_prefetch=0,
            grid=(num_blocks,),
            in_specs=[
                pl.BlockSpec((tile_b, D), lambda i: (i, 0), **spec_kw),
                pl.BlockSpec((tile_b, D), lambda i: (i, 0), **spec_kw),
                pl.BlockSpec((tile_b, 1), lambda i: (i, 0), **spec_kw),
            ],
            out_specs=pl.BlockSpec((1, 1, 1), lambda i: (i, 0, 0)),
        ),
        # On v7x, check with xprof that the single "parallel" axis shards
        # across both TensorCores; switch to pltpu.CORE_PARALLEL if one idles.
        compiler_params=pltpu.CompilerParams(
            dimension_semantics=("parallel",),
            vmem_limit_bytes=vmem_limit,
        ),
        cost_estimate=cost,
    )(output1, output2, t)

    total = jnp.sum(partial_sums)     # num_blocks elements -> trivial reduction
    return total / B if size_average else total


def _reference(output1, output2, target, margin=MARGIN, eps=EPS,
               size_average=True):
    distances = jnp.sum((output2 - output1) ** 2, axis=1)
    hinge = jnp.maximum(margin - jnp.sqrt(distances + eps), 0.0)
    losses = 0.5 * (target * distances + (1.0 - target) * hinge ** 2)
    return jnp.mean(losses) if size_average else jnp.sum(losses)


if __name__ == "__main__":
    key = jax.random.PRNGKey(0)
    k1, k2, k3 = jax.random.split(key, 3)

    # 1) Shapes matching the module's own example: two (1, 5) embeddings.
    o1 = jax.random.uniform(k1, (1, 5), dtype=jnp.float32)
    o2 = jax.random.uniform(k2, (1, 5), dtype=jnp.float32)
    tgt = jax.random.bernoulli(k3, 0.5, (1,)).astype(jnp.int32)
    loss = jax.block_until_ready(contrastive_loss(o1, o2, tgt))
    ref = _reference(o1, o2, tgt.astype(jnp.float32))
    assert jnp.allclose(loss, ref, atol=1e-5, rtol=1e-5), (loss, ref)

    # 2) Multi-block path with an unpadded, masked tail (3 blocks of 8, B=20).
    B2, D2 = 20, 32
    k4, k5, k6 = jax.random.split(k3, 3)
    o1b = jax.random.uniform(k4, (B2, D2), dtype=jnp.float32)
    o2b = jax.random.uniform(k5, (B2, D2), dtype=jnp.float32)
    tb = jax.random.bernoulli(k6, 0.5, (B2,)).astype(jnp.int32)
    loss2 = jax.block_until_ready(contrastive_loss(o1b, o2b, tb, tile_b=8))
    ref2 = _reference(o1b, o2b, tb.astype(jnp.float32))
    assert jnp.allclose(loss2, ref2, atol=1e-5, rtol=1e-5), (loss2, ref2)

    # 3) bf16 streaming path, non-128-multiple D, size_average=False.
    B3, D3 = 24, 160
    k7, k8, k9 = jax.random.split(k6, 3)
    o1c = jax.random.uniform(k7, (B3, D3), dtype=jnp.float32).astype(jnp.bfloat16)
    o2c = jax.random.uniform(k8, (B3, D3), dtype=jnp.float32).astype(jnp.bfloat16)
    tc = jax.random.bernoulli(k9, 0.5, (B3,)).astype(jnp.int32)
    loss3 = jax.block_until_ready(
        contrastive_loss(o1c, o2c, tc, size_average=False, tile_b=16))
    ref3 = _reference(o1c.astype(jnp.float32), o2c.astype(jnp.float32),
                      tc.astype(jnp.float32), size_average=False)
    assert jnp.allclose(loss3, ref3, atol=1e-3, rtol=1e-3), (loss3, ref3)

    print("KERNEL_OK")
</pallas_src>

<mosaic_0001>
module attributes {stable_mosaic.version = 11 : i64} {
  func.func @_contrastive_loss_kernel(%arg0: i32, %arg1: memref<1x5xf32, #tpu.memory_space<vmem>>, %arg2: memref<1x5xf32, #tpu.memory_space<vmem>>, %arg3: memref<1x1xf32, #tpu.memory_space<vmem>>, %arg4: memref<1x1x1xf32, #tpu.memory_space<vmem>>) attributes {dimension_semantics = [#tpu.dimension_semantics<parallel>], iteration_bounds = array<i64: 1>, scalar_prefetch = 0 : i64, scratch_operands = 0 : i64, tpu.core_type = #tpu.core_type<tc>, window_params = [{transform_indices = @transform_0, window_bounds = array<i64: 1, 5>}, {transform_indices = @transform_1, window_bounds = array<i64: 1, 5>}, {transform_indices = @transform_2, window_bounds = array<i64: 1, 1>}, {transform_indices = @transform_3, window_bounds = array<i64: 1, 1, 1>}]} {
    %c0 = arith.constant 0 : index
    %c0_0 = arith.constant 0 : index
    %0 = vector.load %arg1[%c0, %c0_0] : memref<1x5xf32, #tpu.memory_space<vmem>>, vector<1x5xf32>
    %c0_1 = arith.constant 0 : index
    %c0_2 = arith.constant 0 : index
    %1 = vector.load %arg2[%c0_1, %c0_2] : memref<1x5xf32, #tpu.memory_space<vmem>>, vector<1x5xf32>
    %2 = arith.subf %1, %0 : vector<1x5xf32>
    %3 = arith.mulf %2, %2 : vector<1x5xf32>
    %cst = arith.constant dense<0.000000e+00> : vector<1xf32>
    %4 = vector.multi_reduction <add>, %3, %cst [1] : vector<1x5xf32> to vector<1xf32>
    %5 = vector.shape_cast %4 : vector<1xf32> to vector<1x1xf32>
    %c0_3 = arith.constant 0 : index
    %c0_4 = arith.constant 0 : index
    %6 = vector.load %arg3[%c0_3, %c0_4] : memref<1x1xf32, #tpu.memory_space<vmem>>, vector<1x1xf32>
    %cst_5 = arith.constant 9.99999971E-10 : f32
    %7 = vector.broadcast %cst_5 : f32 to vector<1x1xf32>
    %8 = arith.addf %5, %7 : vector<1x1xf32>
    %9 = math.sqrt %8 : vector<1x1xf32>
    %cst_6 = arith.constant 1.000000e+00 : f32
    %10 = vector.broadcast %cst_6 : f32 to vector<1x1xf32>
    %11 = arith.subf %10, %9 : vector<1x1xf32>
    %cst_7 = arith.constant 0.000000e+00 : f32
    %12 = vector.broadcast %cst_7 : f32 to vector<1x1xf32>
    %13 = arith.maximumf %11, %12 : vector<1x1xf32>
    %14 = arith.mulf %6, %5 : vector<1x1xf32>
    %cst_8 = arith.constant 1.000000e+00 : f32
    %15 = vector.broadcast %cst_8 : f32 to vector<1x1xf32>
    %16 = arith.subf %15, %6 : vector<1x1xf32>
    %17 = arith.mulf %16, %13 : vector<1x1xf32>
    %18 = arith.mulf %17, %13 : vector<1x1xf32>
    %19 = arith.addf %14, %18 : vector<1x1xf32>
    %cst_9 = arith.constant 5.000000e-01 : f32
    %20 = vector.broadcast %cst_9 : f32 to vector<1x1xf32>
    %21 = arith.mulf %20, %19 : vector<1x1xf32>
    %c1_i32 = arith.constant 1 : i32
    %22 = arith.muli %arg0, %c1_i32 : i32
    %23 = tpu.iota {dimensions = array<i32: 0>} : vector<1x1xi32>
    %24 = vector.broadcast %22 : i32 to vector<1x1xi32>
    %25 = arith.addi %24, %23 : vector<1x1xi32>
    %c1_i32_10 = arith.constant 1 : i32
    %26 = vector.broadcast %c1_i32_10 : i32 to vector<1x1xi32>
    %27 = arith.cmpi slt, %25, %26 : vector<1x1xi32>
    %cst_11 = arith.constant 0.000000e+00 : f32
    %28 = vector.broadcast %cst_11 : f32 to vector<1x1xf32>
    %29 = arith.select %27, %21, %28 : vector<1x1xi1>, vector<1x1xf32>
    %cst_12 = arith.constant dense<0.000000e+00> : vector<1xf32>
    %30 = vector.multi_reduction <add>, %29, %cst_12 [0] : vector<1x1xf32> to vector<1xf32>
    %31 = vector.shape_cast %30 : vector<1xf32> to vector<1x1xf32>
    %32 = vector.shape_cast %31 : vector<1x1xf32> to vector<1x1x1xf32>
    %c0_13 = arith.constant 0 : index
    %c0_14 = arith.constant 0 : index
    %c0_15 = arith.constant 0 : index
    %33 = vector.load %arg4[%c0_13, %c0_14, %c0_15] : memref<1x1x1xf32, #tpu.memory_space<vmem>>, vector<1x1x1xf32>
    tpu.vector_store %arg4[%c0_13, %c0_14, %c0_15], %32 {strides = array<i32>} : memref<1x1x1xf32, #tpu.memory_space<vmem>>, vector<1x1x1xf32>,
    return
  }
  func.func @transform_0(%arg0: i32) -> (i32, i32) {
    %c0_i32 = arith.constant 0 : i32
    %c0_i32_0 = arith.constant 0 : i32
    return %arg0, %c0_i32 : i32, i32
  }
  func.func @transform_1(%arg0: i32) -> (i32, i32) {
    %c0_i32 = arith.constant 0 : i32
    %c0_i32_0 = arith.constant 0 : i32
    return %arg0, %c0_i32 : i32, i32
  }
  func.func @transform_2(%arg0: i32) -> (i32, i32) {
    %c0_i32 = arith.constant 0 : i32
    %c0_i32_0 = arith.constant 0 : i32
    return %arg0, %c0_i32 : i32, i32
  }
  func.func @transform_3(%arg0: i32) -> (i32, i32, i32) {
    %c0_i32 = arith.constant 0 : i32
    %c0_i32_0 = arith.constant 0 : i32
    %c0_i32_1 = arith.constant 0 : i32
    return %arg0, %c0_i32, %c0_i32_0 : i32, i32, i32
  }
}

</mosaic_0001>

<bundles_post_ra>
// kernel: tpu_custom_call.1
= control target key start
LH: loop header
LB: loop body
LE: loop exit
PB: predicated region body
PF: predicated region fallthrough
CT: control target
= control target key end

     0   :  { %s134_s0 = inlined_call_operand.vmem [shape: f32[1,5], index: 0, kind: input, shape index: {}]   ;;  %s135_s1 = inlined_call_operand.vmem [shape: f32[1,5], index: 1, kind: input, shape index: {}]   ;;  %s136_s2 = inlined_call_operand.<no memory space> [shape: f32[1,1], index: 2, kind: input, shape index: {}]   ;;  %s137_s3 = inlined_call_operand.hbm [shape: f32[1,1,1], index: 3, kind: output, shape index: {}]  }
   0x1   :  { %v8_v0 = vstv %s136_s2 }
   0x2   :  { %9 = vst [vmem:[#allocation2] sm:$0x1] %v8_v0 }
   0x3   :  { %v17_v1 = vld [vmem:[%s134_s0] sm:$0x1] }
   0x4   :  { %v18_v2 = vld [vmem:[%s135_s1] sm:$0x1] }
   0x5   :  { %v19_v3 = vsub.f32 %v18_v2, %v17_v1 }
   0x6   :  { %10 = vsyncpa [#allocation4], 0  ;;  %vm21_vm0 = vcmask 32768   ;;  %v47_v21 = vlaneseq  ;;  %s101_s0 = smov [#allocation3]   ;;  %s63_s19 = sshll.u32 %s137_s3, 4  ;;  %vm54_vm4 = vcmask 0   ;;  %s64_s19 = int_to_ptr.hbm [resolvable:$true] %s63_s19 }
   0x7   :  { %v20_v4 = vmul.f32 %v19_v3, %v19_v3  ;;  %s61_s1 = sshll.u32 %s101_s0, 4  ;;  %s62_s1 = int_to_ptr.vmem [resolvable:$true] %s61_s1 }
   0x8   :  { %v48_v24 = vshrl.u32 %v47_v21, 7 }
   0x9   :  { %v22_v5 = vsel %vm21_vm0, %v20_v4, 0.0  ;;  %v25_v17 = vld [vmem:[#allocation2] sm:$0x1] }
   0xa   :  { %23 = vadd.xlane.f32.xlu0 %v22_v5  ;;  %v42_v20 = vsub.f32 1.0, %v25_v17  ;;  %vm51_vm3 = vcmp.lt.s32.totalorder %v48_v24, 1 }
  0x7d   :  { %v24_v6 = vpop.xlane.xlu0 %23 }
  0x7e   :  { %v26_v7 = vadd.f32 1e-09, %v24_v6  ;;  %v41_v25 = vmul.f32 %v25_v17, %v24_v6 }
  0x80   :  { %73 = vrsqrt.f32 %v26_v7  ;;  %vm34_vm1 = vcmp.eq.f32.partialorder %v26_v7, inf  ;;  %v37_v15 = vand.u32 2147483648, %v26_v7  ;;  %vm36_vm2 = vcmp.eq.f32.partialorder %v26_v7, 0.0 }
  0x86   :  { %v74_v8 = vpop.eup %73 }
  0x87   :  { %v28_v9 = vmul.f32 %v74_v8, %v26_v7 }
  0x89   :  { %v29_v10 = vmul.f32 %v74_v8, %v28_v9 }
  0x8b   :  { %v30_v11 = vmul.f32 0.5, %v29_v10 }
  0x8d   :  { %v31_v12 = vsub.f32 1.5, %v30_v11 }
  0x8f   :  { %v32_v13 = vmul.f32 %v74_v8, %v31_v12 }
  0x91   :  { %v33_v14 = vmul.f32 %v32_v13, %v26_v7 }
  0x93   :  { %v35_v16 = vsel %vm34_vm1, %v26_v7, %v33_v14 }
  0x94   :  { %v38_v18 = vsel %vm36_vm2, %v37_v15, %v35_v16 }
  0x95   :  { %v39_v19 = vsub.f32 1.0, %v38_v18 }
  0x97   :  { %v40_v22 = vmax.f32 %v39_v19, 0.0 }
  0x99   :  { %v43_v23 = vmul.f32 %v42_v20, %v40_v22 }
  0x9b   :  { %v44_v26 = vmul.f32 %v43_v23, %v40_v22 }
  0x9d   :  { %v45_v27 = vadd.f32 %v44_v26, %v41_v25 }
  0x9f   :  { %v46_v28 = vmul.f32 0.5, %v45_v27 }
  0xa1   :  { %v52_v29 = vsel %vm51_vm3, %v46_v28, 0.0 }
  0xa2   :  { %55 = vst.msk [vmem:[#allocation3] sm:$0x1] %vm54_vm4, %v52_v29 }
  0xa3   :  { %66 = dma.vmem_to_hbm [thread:$0]  %s62_s1, 16, %s64_s19, [#allocation4]  }
  0xa4   :  { %99 = dma.done.wait [#allocation4], 16  }
  0xa5   :  { %100 = vsyncadd [#allocation4], 4294967280 }
  0xa6   :  { %71 = vsyncpa [#allocation4], 1 }

</bundles_post_ra>
